<compile_context>
chip_gen: v5e
topology: v5e:2x2
jax: 0.10.0
libtpu: 0.0.40
codegen_flags: <defaults>
</compile_context>

<pallas_src>
import jax
import jax.numpy as jnp
from jax.experimental import pallas as pl
from jax.experimental.pallas import tpu as pltpu


def _flag_kernel(bits_ref, thresh_ref, flag_ref):
    """Bernoulli decision(s) via integer-threshold compare, all in SMEM.

    bits_ref   : (N,) int32, uniform 24-bit random values in [0, 2^24).
    thresh_ref : (N,) int32, round(keep_prob * 2^24).
    flag_ref   : (N,) int32 output, 1 = keep, 0 = drop.
    """
    # N is tiny and static (1 flag here); unrolled scalar ops on the scalar core.
    for i in range(flag_ref.shape[0]):
        keep = bits_ref[i] < thresh_ref[i]
        flag_ref[i] = jnp.where(keep, jnp.int32(1), jnp.int32(0))


@jax.jit
def _bernoulli_flags(key, keep_probs):
    """Draw Bernoulli(keep_probs[i]) flags; returns (N,) bool."""
    keep_probs = jnp.atleast_1d(keep_probs).astype(jnp.float32)
    n = keep_probs.shape[0]
    # Portable counter-based PRNG (works on TPU and in interpret mode), fused
    # into this jit.  Low 24 bits -> uniform integer in [0, 2^24).
    bits = jax.random.bits(key, (n,), dtype=jnp.uint32)
    bits24 = (bits & jnp.uint32(0x00FFFFFF)).astype(jnp.int32)
    # keep_prob = 1.0 -> thresh = 2^24 (always keep); 0.0 -> 0 (never keep).
    thresh = jnp.round(keep_probs * jnp.float32(1 << 24)).astype(jnp.int32)

    flags_i32 = pl.pallas_call(
        _flag_kernel,
        out_shape=jax.ShapeDtypeStruct((n,), jnp.int32),
        in_specs=[
            pl.BlockSpec(memory_space=pltpu.MemorySpace.SMEM),  # bits24
            pl.BlockSpec(memory_space=pltpu.MemorySpace.SMEM),  # thresholds
        ],
        out_specs=pl.BlockSpec(memory_space=pltpu.MemorySpace.SMEM),
    )(bits24, thresh)
    return flags_i32 != 0  # (N,) bool


class BooleanFlag:
    """JAX port of the PyTorch BooleanFlag embedder (stateful boolean flag)."""

    def __init__(self, output_key=None, input_key=None, dropout_rate=0.0):
        self.output_key = output_key
        self.input_key = input_key
        self.dropout_rate = dropout_rate
        self.flag = None  # set by random_dropout_input, returned by forward
        self._rng = jax.random.PRNGKey(0)  # internal stream; split per call

    def _next_key(self):
        self._rng, sub = jax.random.split(self._rng)
        return sub

    def random_dropout_input(self, in_tensor, dropout_rate=None, key=None, *, rng=None):
        del key  # string key, unused (mirrors the PyTorch signature)
        p = self.dropout_rate if dropout_rate is None else dropout_rate
        keep_prob = jnp.asarray(1.0 - p, dtype=jnp.float32)
        draw_key = rng if rng is not None else self._next_key()
        self.flag = _bernoulli_flags(draw_key, keep_prob)  # (1,) bool on device
        # Input passes through unchanged (no kernel / no copy).
        return in_tensor

    def forward(self, *args, **kwargs):
        # Pure dict pass-through of the stored flag -- intentionally no
        # pallas_call (launch overhead >> zero compute; lets XLA fuse).
        del args, kwargs
        key = self.output_key if self.output_key else self.input_key
        return {key: self.flag}

    def details(self) -> str:
        key = self.output_key if self.output_key else self.input_key
        return f"Output key: {key} \n\t This is a boolean flag"


if __name__ == "__main__":
    root = jax.random.PRNGKey(0)
    k_data, k_flag = jax.random.split(root)
    B, T = 2, 8  # small synthetic conditioning tensor (e.g. per-frame fps values)
    in_tensor = jax.random.normal(k_data, (B, T), dtype=jnp.float32)

    mod = BooleanFlag(output_key="use_video_condition")
    mod.input_key = "fps"
    mod.dropout_rate = 0.2

    # Stateful flag draw + input pass-through.
    passed = mod.random_dropout_input(in_tensor, rng=k_flag)
    out = mod.forward()
    flag = jax.block_until_ready(out["use_video_condition"])

    # Structural checks.
    assert passed is in_tensor, "input must pass through untouched"
    assert flag.shape == (1,) and flag.dtype == jnp.bool_, (flag.shape, flag.dtype)
    assert "use_video_condition" in out

    # Deterministic endpoint checks (independent of the PRNG stream):
    #   dropout_rate = 0.0 -> keep prob 1.0 -> flag must be True
    #   dropout_rate = 1.0 -> keep prob 0.0 -> flag must be False
    mod.random_dropout_input(in_tensor, dropout_rate=0.0,
                             rng=jax.random.fold_in(k_flag, 1))
    f1 = jax.block_until_ready(mod.forward()["use_video_condition"])
    assert bool(f1[0]) is True, "keep_prob=1.0 must always keep"

    mod.random_dropout_input(in_tensor, dropout_rate=1.0,
                             rng=jax.random.fold_in(k_flag, 2))
    f0 = jax.block_until_ready(mod.forward()["use_video_condition"])
    assert bool(f0[0]) is False, "keep_prob=0.0 must always drop"

    # Fresh draws per call (stream advances) -- just exercise it, no assert on value.
    mod.random_dropout_input(in_tensor)
    jax.block_until_ready(mod.forward()["use_video_condition"])

    print("KERNEL_OK")
</pallas_src>

<mosaic_0001>
module attributes {stable_mosaic.version = 11 : i64} {
  func.func @_flag_kernel(%arg0: memref<1xi32, #tpu.memory_space<smem>>, %arg1: memref<1xi32, #tpu.memory_space<smem>>, %arg2: memref<1xi32, #tpu.memory_space<smem>>) attributes {dimension_semantics = [], scalar_prefetch = 0 : i64, scratch_operands = 0 : i64, tpu.core_type = #tpu.core_type<tc>} {
    %c0 = arith.constant 0 : index
    %0 = memref.load %arg0[%c0] : memref<1xi32, #tpu.memory_space<smem>>
    %c0_0 = arith.constant 0 : index
    %1 = memref.load %arg1[%c0_0] : memref<1xi32, #tpu.memory_space<smem>>
    %2 = arith.cmpi slt, %0, %1 : i32
    %c1_i32 = arith.constant 1 : i32
    %c0_i32 = arith.constant 0 : i32
    %3 = arith.select %2, %c1_i32, %c0_i32 : i32
    %c0_1 = arith.constant 0 : index
    %4 = memref.load %arg2[%c0_1] : memref<1xi32, #tpu.memory_space<smem>>
    memref.store %3, %arg2[%c0_1] : memref<1xi32, #tpu.memory_space<smem>>
    return
  }
}

</mosaic_0001>

<bundles_post_ra>
// kernel: _bernoulli_flags.1
= control target key start
LH: loop header
LB: loop body
LE: loop exit
PB: predicated region body
PF: predicated region fallthrough
CT: control target
= control target key end

     0   :  { %9 = vsyncpa [#allocation5], 0  ;;  %s50_s17 = smov [#allocation4]   ;;  %s75_s0 = inlined_call_operand.<no memory space> [shape: s32[1], index: 0, kind: input, shape index: {}]   ;;  %s76_s1 = inlined_call_operand.<no memory space> [shape: s32[1], index: 1, kind: input, shape index: {}]   ;;  %s77_s2 = inlined_call_operand.hbm [shape: s32[1], index: 2, kind: output, shape index: {}]  }
   0x1   :  { %p16_p0 = scmp.lt.s32.totalorder %s75_s0, %s76_s1  ;;  %s25_s15 = sshll.u32 %s77_s2, 4  ;;  %s26_s15 = int_to_ptr.hbm [resolvable:$true] %s25_s15 }
   0x3   :  { %s17_s16 = scalar_select %p16_p0, 1, 0 }
   0x5   :  { %19 = sst [smem:[#allocation4]] %s17_s16 }
   0x6   :  { %28 = dma.smem_to_hbm %s50_s17, 16, %s26_s15, [#allocation5]  }
   0x7   :  { %48 = dma.done.wait [#allocation5], 16  }
   0x8   :  { %49 = vsyncadd [#allocation5], 4294967280 }
   0x9   :  { %33 = sfence }
   0xa   :  { %34 = vsyncpa [#allocation5], 1 }

</bundles_post_ra>
